<compile_context>
chip_gen: v7x
topology: tpu7x:2x2x1
jax: 0.10.0
libtpu: 0.0.40
codegen_flags: <defaults>
</compile_context>

<pallas_src>
import jax
import jax.numpy as jnp
from jax.experimental import pallas as pl
from jax.experimental.pallas import tpu as pltpu


LANE = 128   # lane width (last-dim padding target)
SUB = 8      # sublane width (second-to-last-dim padding target)


def _round_up(n, m):
    return ((n + m - 1) // m) * m


def _pad2d(a, rows, cols, dtype=None):
    """Zero-pad a 2-D array up to [rows, cols] (exactness argued in header)."""
    a = jnp.asarray(a)
    out = jnp.pad(a, ((0, rows - a.shape[0]), (0, cols - a.shape[1])))
    return out.astype(dtype) if dtype is not None else out


# ----------------------------------------------------------------------------
# Pallas kernel: the entire MixedN forward (post graph-preprocessing).
# All matmul operands are bf16; accumulation is f32; biases are f32.
# ----------------------------------------------------------------------------
def mixedn_kernel(x_ref, adj_ref, pool_ref,
                  w1_ref, b1_ref,        # fc1  : [Fp, Hp], [1, Hp]
                  wc1_ref, bc1_ref,      # conv1: [Hp, Hp], [1, Hp]
                  w2_ref, b2_ref,        # fc2  : [Hp, Hp], [1, Hp]
                  wc2_ref, bc2_ref,      # conv2: [Hp, Hp], [1, Hp]
                  wf_ref, bf_ref,        # fc   : [Hp, Op], [1, Op]
                  out_ref):              # out  : [Gp, Op]  (lane-dense f32)
    adj = adj_ref[...]                                            # bf16 [Np, Np]

    # fc1 + relu
    h = jnp.dot(x_ref[...], w1_ref[...],
                preferred_element_type=jnp.float32) + b1_ref[...]
    h = jnp.maximum(h, 0.0).astype(jnp.bfloat16)

    # conv1: Â @ (h @ Wc1) + b, relu
    h = jnp.dot(h, wc1_ref[...],
                preferred_element_type=jnp.float32).astype(jnp.bfloat16)
    h = jnp.dot(adj, h, preferred_element_type=jnp.float32) + bc1_ref[...]
    h = jnp.maximum(h, 0.0).astype(jnp.bfloat16)
    # dropout(training=False) -> identity

    # fc2 + relu
    h = jnp.dot(h, w2_ref[...],
                preferred_element_type=jnp.float32) + b2_ref[...]
    h = jnp.maximum(h, 0.0).astype(jnp.bfloat16)

    # conv2: Â @ (h @ Wc2) + b, relu
    h = jnp.dot(h, wc2_ref[...],
                preferred_element_type=jnp.float32).astype(jnp.bfloat16)
    h = jnp.dot(adj, h, preferred_element_type=jnp.float32) + bc2_ref[...]
    h = jnp.maximum(h, 0.0).astype(jnp.bfloat16)

    # Reassociated tail:  pool first ([G,N]x[N,H], G << N), then final linear.
    # Exact because mean-pool rows sum to 1:  pool @ (h@wf + bf) == (pool@h)@wf + bf.
    g = jnp.dot(pool_ref[...], h,
                preferred_element_type=jnp.float32).astype(jnp.bfloat16)
    out_ref[...] = jnp.dot(g, wf_ref[...],
                           preferred_element_type=jnp.float32) + bf_ref[...]


# ----------------------------------------------------------------------------
# Glue: build dense normalized adjacency + pooling matrix, pad, call kernel.
# ----------------------------------------------------------------------------
def gcn_norm_adj(edge_index, num_nodes):
    """Dense  D^{-1/2}(A + I)D^{-1/2}  with Â[dst, src] convention."""
    src, dst = edge_index[0], edge_index[1]
    A = jnp.zeros((num_nodes, num_nodes), jnp.float32).at[dst, src].add(1.0)
    A = A + jnp.eye(num_nodes, dtype=jnp.float32)           # self loops
    deg = A.sum(axis=1)
    dinv = jnp.where(deg > 0, 1.0 / jnp.sqrt(deg), 0.0)
    return dinv[:, None] * A * dinv[None, :]


def mean_pool_matrix(batch, num_graphs):
    onehot = (batch[None, :] == jnp.arange(num_graphs)[:, None]).astype(jnp.float32)
    counts = onehot.sum(axis=1, keepdims=True)
    return onehot / jnp.maximum(counts, 1.0)


def mixedn_forward(x, edge_index, batch, params, num_graphs):
    N, F = x.shape
    H = params["w1"].shape[1]
    O = params["wf"].shape[1]
    G = num_graphs

    adj = gcn_norm_adj(edge_index, N)
    pool = mean_pool_matrix(batch, G)

    # Padded (lane/sublane-dense) sizes. All zero-padding is exact:
    # padded feature/hidden/output columns stay identically zero through every
    # layer, padded nodes never reach real nodes (zero adj columns) nor the
    # pooled output (zero pool columns), and padded graph rows are sliced off.
    Np = _round_up(N, SUB)
    Fp = _round_up(F, LANE)
    Hp = _round_up(H, LANE)
    Op = _round_up(O, LANE)
    Gp = _round_up(G, SUB)

    bf16 = jnp.bfloat16
    f32 = jnp.float32

    args = (
        _pad2d(x, Np, Fp, bf16),
        _pad2d(adj, Np, Np, bf16),
        _pad2d(pool, Gp, Np, bf16),
        _pad2d(params["w1"], Fp, Hp, bf16), _pad2d(params["b1"], 1, Hp, f32),
        _pad2d(params["wc1"], Hp, Hp, bf16), _pad2d(params["bc1"], 1, Hp, f32),
        _pad2d(params["w2"], Hp, Hp, bf16), _pad2d(params["b2"], 1, Hp, f32),
        _pad2d(params["wc2"], Hp, Hp, bf16), _pad2d(params["bc2"], 1, Hp, f32),
        _pad2d(params["wf"], Hp, Op, bf16), _pad2d(params["bf"], 1, Op, f32),
    )

    # Advisory cost estimate (padded shapes; 2*M*K*N per matmul).
    flops = 2 * (Np * Fp * Hp          # fc1
                 + 3 * Np * Hp * Hp    # h@wc1, fc2, h@wc2
                 + 2 * Np * Np * Hp    # two Â matmuls
                 + Gp * Np * Hp        # pool @ h
                 + Gp * Hp * Op)       # g @ wf
    bytes_accessed = sum(int(a.size) * a.dtype.itemsize for a in args) + Gp * Op * 4

    vmem = pl.BlockSpec(memory_space=pltpu.MemorySpace.VMEM)
    out_padded = pl.pallas_call(
        mixedn_kernel,
        out_shape=jax.ShapeDtypeStruct((Gp, Op), jnp.float32),
        in_specs=[vmem] * len(args),
        out_specs=pl.BlockSpec(memory_space=pltpu.MemorySpace.VMEM),
        compiler_params=pltpu.CompilerParams(
            vmem_limit_bytes=32 * 1024 * 1024),
        cost_estimate=pl.CostEstimate(flops=flops, transcendentals=0,
                                      bytes_accessed=bytes_accessed),
    )(*args)

    return out_padded[:G, :O]


# ----------------------------------------------------------------------------
# Pure-JAX f32 reference (same math, unpadded) for a correctness check.
# ----------------------------------------------------------------------------
def mixedn_ref(x, edge_index, batch, params, num_graphs):
    adj = gcn_norm_adj(edge_index, x.shape[0])
    pool = mean_pool_matrix(batch, num_graphs)
    h = jnp.maximum(x @ params["w1"] + params["b1"], 0.0)
    h = jnp.maximum(adj @ (h @ params["wc1"]) + params["bc1"], 0.0)
    h = jnp.maximum(h @ params["w2"] + params["b2"], 0.0)
    h = jnp.maximum(adj @ (h @ params["wc2"]) + params["bc2"], 0.0)
    h = h @ params["wf"] + params["bf"]
    return pool @ h


if __name__ == "__main__":
    num_features, num_hidden, num_output = 8, 32, 4
    N, G = 16, 2                                   # 16 nodes, 2 graphs

    key = jax.random.PRNGKey(0)
    ks = jax.random.split(key, 12)

    # Deterministic synthetic parameters (shapes follow the module __init__).
    def init(k, shape, scale=0.1):
        return (scale * jax.random.normal(k, shape)).astype(jnp.float32)

    params = {
        "w1":  init(ks[0], (num_features, num_hidden)),
        "b1":  init(ks[1], (1, num_hidden)),
        "wc1": init(ks[2], (num_hidden, num_hidden)),
        "bc1": init(ks[3], (1, num_hidden)),
        "w2":  init(ks[4], (num_hidden, num_hidden)),
        "b2":  init(ks[5], (1, num_hidden)),
        "wc2": init(ks[6], (num_hidden, num_hidden)),
        "bc2": init(ks[7], (1, num_hidden)),
        "wf":  init(ks[8], (num_hidden, num_output)),
        "bf":  init(ks[9], (1, num_output)),
    }

    # Node features.
    x = jax.random.normal(ks[10], (N, num_features), dtype=jnp.float32)

    # Two 8-node ring graphs (directed edges both ways), batch assignment.
    def ring_edges(offset, n):
        s = jnp.arange(n) + offset
        d = (jnp.arange(n) + 1) % n + offset
        return jnp.stack([jnp.concatenate([s, d]), jnp.concatenate([d, s])])

    e0 = ring_edges(0, 8)
    e1 = ring_edges(8, 8)
    edge_index = jnp.concatenate([e0, e1], axis=1).astype(jnp.int32)   # [2, E]
    batch = jnp.concatenate([jnp.zeros(8, jnp.int32), jnp.ones(8, jnp.int32)])

    out = mixedn_forward(x, edge_index, batch, params, G)
    out = jax.block_until_ready(out)

    ref = mixedn_ref(x, edge_index, batch, params, G)
    assert out.shape == (G, num_output)
    # bf16 operands (f32 accumulate) -> loosened tolerance vs the f32 reference.
    assert jnp.allclose(out, ref, atol=3e-2, rtol=3e-2)

    print("KERNEL_OK")
</pallas_src>

<mosaic_0001>
module attributes {stable_mosaic.version = 11 : i64} {
  func.func @mixedn_kernel(%arg0: memref<16x128xbf16, #tpu.memory_space<vmem>>, %arg1: memref<16x16xbf16, #tpu.memory_space<vmem>>, %arg2: memref<8x16xbf16, #tpu.memory_space<vmem>>, %arg3: memref<128x128xbf16, #tpu.memory_space<vmem>>, %arg4: memref<1x128xf32, #tpu.memory_space<vmem>>, %arg5: memref<128x128xbf16, #tpu.memory_space<vmem>>, %arg6: memref<1x128xf32, #tpu.memory_space<vmem>>, %arg7: memref<128x128xbf16, #tpu.memory_space<vmem>>, %arg8: memref<1x128xf32, #tpu.memory_space<vmem>>, %arg9: memref<128x128xbf16, #tpu.memory_space<vmem>>, %arg10: memref<1x128xf32, #tpu.memory_space<vmem>>, %arg11: memref<128x128xbf16, #tpu.memory_space<vmem>>, %arg12: memref<1x128xf32, #tpu.memory_space<vmem>>, %arg13: memref<8x128xf32, #tpu.memory_space<vmem>>) attributes {dimension_semantics = [], scalar_prefetch = 0 : i64, scratch_operands = 0 : i64, tpu.core_type = #tpu.core_type<tc>} {
    %c0 = arith.constant 0 : index
    %c0_0 = arith.constant 0 : index
    %0 = vector.load %arg1[%c0, %c0_0] : memref<16x16xbf16, #tpu.memory_space<vmem>>, vector<16x16xbf16>
    %c0_1 = arith.constant 0 : index
    %c0_2 = arith.constant 0 : index
    %1 = vector.load %arg0[%c0_1, %c0_2] : memref<16x128xbf16, #tpu.memory_space<vmem>>, vector<16x128xbf16>
    %c0_3 = arith.constant 0 : index
    %c0_4 = arith.constant 0 : index
    %2 = vector.load %arg3[%c0_3, %c0_4] : memref<128x128xbf16, #tpu.memory_space<vmem>>, vector<128x128xbf16>
    %cst = arith.constant dense<0.000000e+00> : vector<16x128xf32>
    %3 = tpu.matmul %1, %2, %cst {dimension_numbers = #tpu.dot_dimension_numbers<[1], [0], [0], [1], [0, 0, 1, 1], [], []>} : vector<16x128xbf16>, vector<128x128xbf16>, vector<16x128xf32> -> vector<16x128xf32>
    %c0_5 = arith.constant 0 : index
    %c0_6 = arith.constant 0 : index
    %4 = vector.load %arg4[%c0_5, %c0_6] : memref<1x128xf32, #tpu.memory_space<vmem>>, vector<1x128xf32>
    %5 = vector.broadcast %4 : vector<1x128xf32> to vector<16x128xf32>
    %6 = arith.addf %3, %5 : vector<16x128xf32>
    %cst_7 = arith.constant 0.000000e+00 : f32
    %7 = vector.broadcast %cst_7 : f32 to vector<16x128xf32>
    %8 = arith.maximumf %6, %7 : vector<16x128xf32>
    %9 = arith.truncf %8 : vector<16x128xf32> to vector<16x128xbf16>
    %c0_8 = arith.constant 0 : index
    %c0_9 = arith.constant 0 : index
    %10 = vector.load %arg5[%c0_8, %c0_9] : memref<128x128xbf16, #tpu.memory_space<vmem>>, vector<128x128xbf16>
    %cst_10 = arith.constant dense<0.000000e+00> : vector<16x128xf32>
    %11 = tpu.matmul %9, %10, %cst_10 {dimension_numbers = #tpu.dot_dimension_numbers<[1], [0], [0], [1], [0, 0, 1, 1], [], []>} : vector<16x128xbf16>, vector<128x128xbf16>, vector<16x128xf32> -> vector<16x128xf32>
    %12 = arith.truncf %11 : vector<16x128xf32> to vector<16x128xbf16>
    %cst_11 = arith.constant dense<0.000000e+00> : vector<16x128xf32>
    %13 = tpu.matmul %0, %12, %cst_11 {dimension_numbers = #tpu.dot_dimension_numbers<[1], [0], [0], [1], [0, 0, 1, 1], [], []>} : vector<16x16xbf16>, vector<16x128xbf16>, vector<16x128xf32> -> vector<16x128xf32>
    %c0_12 = arith.constant 0 : index
    %c0_13 = arith.constant 0 : index
    %14 = vector.load %arg6[%c0_12, %c0_13] : memref<1x128xf32, #tpu.memory_space<vmem>>, vector<1x128xf32>
    %15 = vector.broadcast %14 : vector<1x128xf32> to vector<16x128xf32>
    %16 = arith.addf %13, %15 : vector<16x128xf32>
    %cst_14 = arith.constant 0.000000e+00 : f32
    %17 = vector.broadcast %cst_14 : f32 to vector<16x128xf32>
    %18 = arith.maximumf %16, %17 : vector<16x128xf32>
    %19 = arith.truncf %18 : vector<16x128xf32> to vector<16x128xbf16>
    %c0_15 = arith.constant 0 : index
    %c0_16 = arith.constant 0 : index
    %20 = vector.load %arg7[%c0_15, %c0_16] : memref<128x128xbf16, #tpu.memory_space<vmem>>, vector<128x128xbf16>
    %cst_17 = arith.constant dense<0.000000e+00> : vector<16x128xf32>
    %21 = tpu.matmul %19, %20, %cst_17 {dimension_numbers = #tpu.dot_dimension_numbers<[1], [0], [0], [1], [0, 0, 1, 1], [], []>} : vector<16x128xbf16>, vector<128x128xbf16>, vector<16x128xf32> -> vector<16x128xf32>
    %c0_18 = arith.constant 0 : index
    %c0_19 = arith.constant 0 : index
    %22 = vector.load %arg8[%c0_18, %c0_19] : memref<1x128xf32, #tpu.memory_space<vmem>>, vector<1x128xf32>
    %23 = vector.broadcast %22 : vector<1x128xf32> to vector<16x128xf32>
    %24 = arith.addf %21, %23 : vector<16x128xf32>
    %cst_20 = arith.constant 0.000000e+00 : f32
    %25 = vector.broadcast %cst_20 : f32 to vector<16x128xf32>
    %26 = arith.maximumf %24, %25 : vector<16x128xf32>
    %27 = arith.truncf %26 : vector<16x128xf32> to vector<16x128xbf16>
    %c0_21 = arith.constant 0 : index
    %c0_22 = arith.constant 0 : index
    %28 = vector.load %arg9[%c0_21, %c0_22] : memref<128x128xbf16, #tpu.memory_space<vmem>>, vector<128x128xbf16>
    %cst_23 = arith.constant dense<0.000000e+00> : vector<16x128xf32>
    %29 = tpu.matmul %27, %28, %cst_23 {dimension_numbers = #tpu.dot_dimension_numbers<[1], [0], [0], [1], [0, 0, 1, 1], [], []>} : vector<16x128xbf16>, vector<128x128xbf16>, vector<16x128xf32> -> vector<16x128xf32>
    %30 = arith.truncf %29 : vector<16x128xf32> to vector<16x128xbf16>
    %cst_24 = arith.constant dense<0.000000e+00> : vector<16x128xf32>
    %31 = tpu.matmul %0, %30, %cst_24 {dimension_numbers = #tpu.dot_dimension_numbers<[1], [0], [0], [1], [0, 0, 1, 1], [], []>} : vector<16x16xbf16>, vector<16x128xbf16>, vector<16x128xf32> -> vector<16x128xf32>
    %c0_25 = arith.constant 0 : index
    %c0_26 = arith.constant 0 : index
    %32 = vector.load %arg10[%c0_25, %c0_26] : memref<1x128xf32, #tpu.memory_space<vmem>>, vector<1x128xf32>
    %33 = vector.broadcast %32 : vector<1x128xf32> to vector<16x128xf32>
    %34 = arith.addf %31, %33 : vector<16x128xf32>
    %cst_27 = arith.constant 0.000000e+00 : f32
    %35 = vector.broadcast %cst_27 : f32 to vector<16x128xf32>
    %36 = arith.maximumf %34, %35 : vector<16x128xf32>
    %37 = arith.truncf %36 : vector<16x128xf32> to vector<16x128xbf16>
    %c0_28 = arith.constant 0 : index
    %c0_29 = arith.constant 0 : index
    %38 = vector.load %arg2[%c0_28, %c0_29] : memref<8x16xbf16, #tpu.memory_space<vmem>>, vector<8x16xbf16>
    %cst_30 = arith.constant dense<0.000000e+00> : vector<8x128xf32>
    %39 = tpu.matmul %38, %37, %cst_30 {dimension_numbers = #tpu.dot_dimension_numbers<[1], [0], [0], [1], [0, 0, 1, 1], [], []>} : vector<8x16xbf16>, vector<16x128xbf16>, vector<8x128xf32> -> vector<8x128xf32>
    %40 = arith.truncf %39 : vector<8x128xf32> to vector<8x128xbf16>
    %c0_31 = arith.constant 0 : index
    %c0_32 = arith.constant 0 : index
    %41 = vector.load %arg11[%c0_31, %c0_32] : memref<128x128xbf16, #tpu.memory_space<vmem>>, vector<128x128xbf16>
    %cst_33 = arith.constant dense<0.000000e+00> : vector<8x128xf32>
    %42 = tpu.matmul %40, %41, %cst_33 {dimension_numbers = #tpu.dot_dimension_numbers<[1], [0], [0], [1], [0, 0, 1, 1], [], []>} : vector<8x128xbf16>, vector<128x128xbf16>, vector<8x128xf32> -> vector<8x128xf32>
    %c0_34 = arith.constant 0 : index
    %c0_35 = arith.constant 0 : index
    %43 = vector.load %arg12[%c0_34, %c0_35] : memref<1x128xf32, #tpu.memory_space<vmem>>, vector<1x128xf32>
    %44 = vector.broadcast %43 : vector<1x128xf32> to vector<8x128xf32>
    %45 = arith.addf %42, %44 : vector<8x128xf32>
    %c0_36 = arith.constant 0 : index
    %c0_37 = arith.constant 0 : index
    %46 = vector.load %arg13[%c0_36, %c0_37] : memref<8x128xf32, #tpu.memory_space<vmem>>, vector<8x128xf32>
    tpu.vector_store %arg13[%c0_36, %c0_37], %45 {strides = array<i32>} : memref<8x128xf32, #tpu.memory_space<vmem>>, vector<8x128xf32>,
    return
  }
}

</mosaic_0001>

<bundles_post_ra>
// kernel: tpu_custom_call.1
= control target key start
LH: loop header
LB: loop body
LE: loop exit
PB: predicated region body
PF: predicated region fallthrough
CT: control target
= control target key end

     0   :  { %18 = vsyncpa [#allocation3], 0  ;;  %s1642_s0 = inlined_call_operand.hbm [shape: bf16[16,128], index: 0, kind: input, shape index: {}]   ;;  %s1643_s1 = inlined_call_operand.hbm [shape: bf16[16,16], index: 1, kind: input, shape index: {}]   ;;  %s1644_s2 = inlined_call_operand.vmem [shape: bf16[8,16], index: 2, kind: input, shape index: {}]   ;;  %s1645_s3 = inlined_call_operand.hbm [shape: bf16[128,128], index: 3, kind: input, shape index: {}]   ;;  %s1646_s4 = inlined_call_operand.vmem [shape: f32[1,128], index: 4, kind: input, shape index: {}]   ;;  %s1647_s5 = inlined_call_operand.hbm [shape: bf16[128,128], index: 5, kind: input, shape index: {}]   ;;  %s1648_s6 = inlined_call_operand.vmem [shape: f32[1,128], index: 6, kind: input, shape index: {}]   ;;  %s1649_s7 = inlined_call_operand.hbm [shape: bf16[128,128], index: 7, kind: input, shape index: {}]   ;;  %s1650_s8 = inlined_call_operand.vmem [shape: f32[1,128], index: 8, kind: input, shape index: {}]   ;;  %s1651_s9 = inlined_call_operand.hbm [shape: bf16[128,128], index: 9, kind: input, shape index: {}]   ;;  %s1652_s10 = inlined_call_operand.vmem [shape: f32[1,128], index: 10, kind: input, shape index: {}]   ;;  %s1653_s11 = inlined_call_operand.hbm [shape: bf16[128,128], index: 11, kind: input, shape index: {}]   ;;  %s1654_s12 = inlined_call_operand.vmem [shape: f32[1,128], index: 12, kind: input, shape index: {}]   ;;  %s1655_s13 = inlined_call_operand.hbm [shape: f32[8,128], index: 13, kind: output, shape index: {}]  }
   0x1   :  { %19 = vsyncpa [#allocation6], 0 }
   0x2   :  { %20 = vsyncpa [#allocation9], 0 }
   0x3   :  { %21 = vsyncpa [#allocation12], 0 }
   0x4   :  { %22 = vsyncpa [#allocation4], 0  ;;  %s1338_s25 = smov [#allocation5]   ;;  %s1339_s27 = smov [#allocation8]  }
   0x5   :  { %s40_s26 = sshll.u32 %s1338_s25, 4  ;;  %s68_s28 = sshll.u32 %s1339_s27, 4  ;;  %s41_s26 = int_to_ptr.vmem [resolvable:$true] %s40_s26  ;;  %s1420_s28 = int_to_ptr.vmem [resolvable:$true] %s68_s28 }
   0x6   :  { %s1152_s14 = scalar_lea.hbm %s1643_s1, 128 }
   0x7   :  { %p1153_p0 = scmp.ne.s32.totalorder %s1643_s1, %s1152_s14  ;;  %p1156_p1 = scmp.lt.u32.totalorder %s1152_s14, %s1643_s1 }
   0x9   :  { %p1158_p2 = pnand %p1156_p1, %p1153_p0 }
   0xb   :  { %1161 = shalt.err (!%p1158_p2)
}
   0xc   :  { %s1162_s19 = scalar_lea.vmem %s41_s26, 128  ;;  %p1167_p4 = scmp.lt.s32.totalorder %s41_s26, %s41_s26 }
   0xd   :  { %p1163_p3 = scmp.ne.s32.totalorder %s41_s26, %s1162_s19  ;;  %p1168_p5 = scmp.lt.s32.totalorder %s1162_s19, %s1162_s19 }
   0xf   :  { %p1169_p6 = por %p1168_p5, %p1167_p4 }
  0x11   :  { %p1170_p7 = pnand %p1169_p6, %p1163_p3 }
  0x13   :  { %1173 = shalt.err (!%p1170_p7)
}
  0x14   :  { %s1340_s20 = smov 64   ;;  %s1341_s21 = smov 4  }
  0x15   :  { %46 = dma.hbm_to_vmem [thread:$0]  %s1643_s1, 128, %s41_s26, [#allocation6], %s1340_s20, %s1340_s20, %s1341_s21  }
  0x16   :  { %s1174_s27 = scalar_lea.hbm %s1647_s5, 1024 }
  0x17   :  { %p1175_p8 = scmp.ne.s32.totalorder %s1647_s5, %s1174_s27  ;;  %p1178_p9 = scmp.lt.u32.totalorder %s1174_s27, %s1647_s5 }
  0x19   :  { %p1180_p10 = pnand %p1178_p9, %p1175_p8 }
  0x1b   :  { %1183 = shalt.err (!%p1180_p10)
}
  0x1c   :  { %s1184_s16 = scalar_lea.vmem %s1420_s28, 1024  ;;  %p1189_p12 = scmp.lt.s32.totalorder %s1420_s28, %s1420_s28 }
  0x1d   :  { %p1185_p11 = scmp.ne.s32.totalorder %s1420_s28, %s1184_s16  ;;  %p1190_p13 = scmp.lt.s32.totalorder %s1184_s16, %s1184_s16 }
  0x1f   :  { %p1191_p0 = por %p1190_p13, %p1189_p12 }
  0x21   :  { %p1192_p1 = pnand %p1191_p0, %p1185_p11 }
  0x23   :  { %1195 = shalt.err (!%p1192_p1)
}
  0x24   :  { %74 = dma.hbm_to_vmem [thread:$0]  %s1647_s5, 1024, %s1420_s28, [#allocation9], %s1340_s20, %s1340_s20, %s1341_s21  }
  0x25   :  { %s1342_s17 = smov [#allocation11]   ;;  %s1343_s19 = smov [#allocation2]  }
  0x26   :  { %s96_s18 = sshll.u32 %s1342_s17, 4  ;;  %s28_s22 = sshll.u32 %s1343_s19, 4  ;;  %s97_s18 = int_to_ptr.vmem [resolvable:$true] %s96_s18  ;;  %s1457_s22 = int_to_ptr.vmem [resolvable:$true] %s28_s22 }
  0x27   :  { %s1196_s25 = scalar_lea.hbm %s1651_s9, 1024 }
  0x28   :  { %p1197_p2 = scmp.ne.s32.totalorder %s1651_s9, %s1196_s25  ;;  %p1200_p3 = scmp.lt.u32.totalorder %s1196_s25, %s1651_s9 }
  0x2a   :  { %p1202_p4 = pnand %p1200_p3, %p1197_p2 }
  0x2c   :  { %1205 = shalt.err (!%p1202_p4)
}
  0x2d   :  { %s1206_s5 = scalar_lea.vmem %s97_s18, 1024  ;;  %p1211_p6 = scmp.lt.s32.totalorder %s97_s18, %s97_s18 }
  0x2e   :  { %p1207_p5 = scmp.ne.s32.totalorder %s97_s18, %s1206_s5  ;;  %p1212_p7 = scmp.lt.s32.totalorder %s1206_s5, %s1206_s5 }
  0x30   :  { %p1213_p8 = por %p1212_p7, %p1211_p6 }
  0x32   :  { %p1214_p9 = pnand %p1213_p8, %p1207_p5 }
  0x34   :  { %1217 = shalt.err (!%p1214_p9)
}
  0x35   :  { %102 = dma.hbm_to_vmem [thread:$0]  %s1651_s9, 1024, %s97_s18, [#allocation12], %s1340_s20, %s1340_s20, %s1341_s21  }
  0x36   :  { %s1218_s26 = scalar_lea.hbm %s1642_s0, 128 }
  0x37   :  { %p1219_p10 = scmp.ne.s32.totalorder %s1642_s0, %s1218_s26  ;;  %p1222_p11 = scmp.lt.u32.totalorder %s1218_s26, %s1642_s0 }
  0x39   :  { %p1224_p12 = pnand %p1222_p11, %p1219_p10 }
  0x3b   :  { %1227 = shalt.err (!%p1224_p12)
}
  0x3c   :  { %s1228_s25 = scalar_lea.vmem %s1457_s22, 128  ;;  %p1233_p0 = scmp.lt.s32.totalorder %s1457_s22, %s1457_s22 }
  0x3d   :  { %p1229_p13 = scmp.ne.s32.totalorder %s1457_s22, %s1228_s25  ;;  %p1234_p1 = scmp.lt.s32.totalorder %s1228_s25, %s1228_s25 }
  0x3f   :  { %p1235_p2 = por %p1234_p1, %p1233_p0 }
  0x41   :  { %p1236_p3 = pnand %p1235_p2, %p1229_p13 }
  0x43   :  { %1239 = shalt.err (!%p1236_p3)
}
  0x44   :  { %34 = dma.hbm_to_vmem [thread:$0]  %s1642_s0, 128, %s1457_s22, [#allocation3], %s1340_s20, %s1340_s20, %s1341_s21  }
  0x45   :  { %s1344_s27 = smov [#allocation7]   ;;  %s1345_s30 = smov [#allocation10]  }
  0x46   :  { %s54_s29 = sshll.u32 %s1344_s27, 4  ;;  %s82_s14 = sshll.u32 %s1345_s30, 4  ;;  %s55_s29 = int_to_ptr.vmem [resolvable:$true] %s54_s29  ;;  %s1494_s14 = int_to_ptr.vmem [resolvable:$true] %s82_s14 }
  0x47   :  { %s1240_s15 = scalar_lea.hbm %s1645_s3, 1024 }
  0x48   :  { %p1241_p4 = scmp.ne.s32.totalorder %s1645_s3, %s1240_s15  ;;  %p1244_p5 = scmp.lt.u32.totalorder %s1240_s15, %s1645_s3 }
  0x4a   :  { %p1246_p6 = pnand %p1244_p5, %p1241_p4 }
  0x4c   :  { %1249 = shalt.err (!%p1246_p6)
}
  0x4d   :  { %s1250_s0 = scalar_lea.vmem %s55_s29, 1024  ;;  %p1255_p8 = scmp.lt.s32.totalorder %s55_s29, %s55_s29 }
  0x4e   :  { %p1251_p7 = scmp.ne.s32.totalorder %s55_s29, %s1250_s0  ;;  %p1256_p9 = scmp.lt.s32.totalorder %s1250_s0, %s1250_s0 }
  0x50   :  { %p1257_p10 = por %p1256_p9, %p1255_p8 }
  0x52   :  { %p1258_p11 = pnand %p1257_p10, %p1251_p7 }
  0x54   :  { %1261 = shalt.err (!%p1258_p11)
}
  0x55   :  { %60 = dma.hbm_to_vmem [thread:$0]  %s1645_s3, 1024, %s55_s29, [#allocation6], %s1340_s20, %s1340_s20, %s1341_s21  }
  0x56   :  { %s1262_s25 = scalar_lea.hbm %s1649_s7, 1024 }
  0x57   :  { %p1263_p12 = scmp.ne.s32.totalorder %s1649_s7, %s1262_s25  ;;  %p1266_p13 = scmp.lt.u32.totalorder %s1262_s25, %s1649_s7 }
  0x59   :  { %p1268_p0 = pnand %p1266_p13, %p1263_p12 }
  0x5b   :  { %1271 = shalt.err (!%p1268_p0)
}
  0x5c   :  { %s1272_s5 = scalar_lea.vmem %s1494_s14, 1024  ;;  %p1277_p2 = scmp.lt.s32.totalorder %s1494_s14, %s1494_s14 }
  0x5d   :  { %p1273_p1 = scmp.ne.s32.totalorder %s1494_s14, %s1272_s5  ;;  %p1278_p3 = scmp.lt.s32.totalorder %s1272_s5, %s1272_s5 }
  0x5f   :  { %p1279_p4 = por %p1278_p3, %p1277_p2 }
  0x61   :  { %p1280_p5 = pnand %p1279_p4, %p1273_p1 }
  0x63   :  { %1283 = shalt.err (!%p1280_p5)
}
  0x64   :  { %88 = dma.hbm_to_vmem [thread:$0]  %s1649_s7, 1024, %s1494_s14, [#allocation9], %s1340_s20, %s1340_s20, %s1341_s21  }
  0x65   :  { %s1346_s28 = smov [#allocation13]   ;;  %s1284_s26 = scalar_lea.hbm %s1653_s11, 1024 }
  0x66   :  { %s110_s15 = sshll.u32 %s1346_s28, 4  ;;  %p1285_p6 = scmp.ne.s32.totalorder %s1653_s11, %s1284_s26  ;;  %s111_s15 = int_to_ptr.vmem [resolvable:$true] %s110_s15 }
  0x67   :  { %p1288_p7 = scmp.lt.u32.totalorder %s1284_s26, %s1653_s11 }
  0x69   :  { %p1290_p8 = pnand %p1288_p7, %p1285_p6 }
  0x6b   :  { %1293 = shalt.err (!%p1290_p8)
}
  0x6c   :  { %s1294_s23 = scalar_lea.vmem %s111_s15, 1024  ;;  %p1299_p10 = scmp.lt.s32.totalorder %s111_s15, %s111_s15 }
  0x6d   :  { %p1295_p9 = scmp.ne.s32.totalorder %s111_s15, %s1294_s23  ;;  %p1300_p11 = scmp.lt.s32.totalorder %s1294_s23, %s1294_s23 }
  0x6f   :  { %p1301_p12 = por %p1300_p11, %p1299_p10 }
  0x71   :  { %p1302_p13 = pnand %p1301_p12, %p1295_p9 }
  0x73   :  { %1305 = shalt.err (!%p1302_p13)
}
  0x74   :  { %116 = dma.hbm_to_vmem [thread:$0]  %s1653_s11, 1024, %s111_s15, [#allocation12], %s1340_s20, %s1340_s20, %s1341_s21  }
  0x75   :  { %1328 = dma.done.wait [#allocation3], 128  }
  0x76   :  { %1329 = vsyncadd [#allocation3], 4294967168 }
  0x77   :  { %1330 = dma.done.wait [#allocation6], 1152  }
  0x78   :  { %1331 = vsyncadd [#allocation6], 4294966144 }
  0x79   :  { %1332 = dma.done.wait [#allocation9], 2048  }
  0x7a   :  { %1333 = vsyncadd [#allocation9], 4294965248 }
  0x7b   :  { %1334 = dma.done.wait [#allocation12], 2048  }
  0x7c   :  { %1335 = vsyncadd [#allocation12], 4294965248  ;;  %v1347_v0 = vmov 0.0   ;;  %vm1348_vm0 = vmmov 0   ;;  %v1110_v1 = vld [vmem:[#allocation7] sm:$0xff]   ;;  %v1111_v2 = vld [vmem:[#allocation7 + $0x8] sm:$0xff]  }
  0x7d   :  { %980 = vmatprep.subr.bf16.mxu0 %v1347_v0  ;;  %996 = vmatprep.mubr.msk.bf16.mxu0 %vm1348_vm0, %v1347_v0  ;;  %v1112_v3 = vld [vmem:[#allocation7 + $0x10] sm:$0xff]   ;;  %v1119_v4 = vld [vmem:[#allocation8] sm:$0xff]   ;;  %v1113_v5 = vld [vmem:[#allocation7 + $0x18] sm:$0xff]   ;;  %vm384_vm1 = vcmask 130048   ;;  %s1349_s30 = smov [#allocation14]  }
  0x7e   :  { %1000 = vmatprep.subr.bf16.mxu1 %v1347_v0  ;;  %1016 = vmatprep.mubr.msk.bf16.mxu1 %vm1348_vm0, %v1347_v0  ;;  %v1120_v6 = vld [vmem:[#allocation8 + $0x8] sm:$0xff]   ;;  %v1114_v7 = vld [vmem:[#allocation7 + $0x20] sm:$0xff]   ;;  %v1121_v8 = vld [vmem:[#allocation8 + $0x10] sm:$0xff]   ;;  %s867_s5 = sshll.u32 %s1349_s30, 4  ;;  %s868_s5 = int_to_ptr.vmem [resolvable:$true] %s867_s5 }
  0x7f   :  { %981 = vmatpush3.bf16.msra.mxu0 %v1110_v1  ;;  %1001 = vmatpush3.bf16.msra.mxu1 %v1119_v4  ;;  %v1115_v9 = vld [vmem:[#allocation7 + $0x28] sm:$0xff]   ;;  %v1122_v10 = vld [vmem:[#allocation8 + $0x18] sm:$0xff]   ;;  %v1116_v11 = vld [vmem:[#allocation7 + $0x30] sm:$0xff]   ;;  %p1311_p1 = scmp.lt.s32.totalorder %s868_s5, %s868_s5 }
  0x80   :  { %982 = vmatprep.subr.bf16.mxu0 %v1347_v0  ;;  %1002 = vmatprep.subr.bf16.mxu1 %v1347_v0  ;;  %v1123_v12 = vld [vmem:[#allocation8 + $0x20] sm:$0xff]   ;;  %v1117_v13 = vld [vmem:[#allocation7 + $0x38] sm:$0xff]   ;;  %v1124_v14 = vld [vmem:[#allocation8 + $0x28] sm:$0xff]  }
  0x81   :  { %v1118_v15 = vld [vmem:[#allocation2] sm:$0xff]   ;;  %v1126_v17 = vld [vmem:[#allocation8 + $0x38] sm:$0xff]   ;;  %v1128_v28 = vld [vmem:[#allocation10] sm:$0xff]  }
  0x82   :  { %v1125_v16 = vld [vmem:[#allocation8 + $0x30] sm:$0xff]   ;;  %v1129_v29 = vld [vmem:[#allocation10 + $0x8] sm:$0xff]   ;;  %v1131_v31 = vld [vmem:[#allocation10 + $0x18] sm:$0xff]  }
  0x83   :  { %983 = vmatpush3.bf16.msra.mxu0 %v1111_v2  ;;  %1003 = vmatpush3.bf16.msra.mxu1 %v1120_v6  ;;  %v879_v18 = vld [vmem:[%s1646_s4] ss:$0 sm:$0xff]  ;;  %v1132_v32 = vld [vmem:[#allocation10 + $0x20] sm:$0xff]   ;;  %v1133_v33 = vld [vmem:[#allocation10 + $0x28] sm:$0xff]  }
  0x84   :  { %984 = vmatprep.subr.bf16.mxu0 %v1347_v0  ;;  %1004 = vmatprep.subr.bf16.mxu1 %v1347_v0  ;;  %v1130_v30 = vld [vmem:[#allocation10 + $0x10] sm:$0xff]   ;;  %v1581_v39 = vld [vmem:[#allocation5] sm:$0xff]   ;;  %v1136_v42 = vld [vmem:[#allocation11] sm:$0xff]  }
  0x85   :  { %v1134_v40 = vld [vmem:[#allocation10 + $0x30] sm:$0xff]   ;;  %v1135_v41 = vld [vmem:[#allocation10 + $0x38] sm:$0xff]   ;;  %v1137_v43 = vld [vmem:[#allocation11 + $0x8] sm:$0xff]  }
  0x86   :  { %v1138_v44 = vld [vmem:[#allocation11 + $0x10] sm:$0xff]   ;;  %v1139_v45 = vld [vmem:[#allocation11 + $0x18] sm:$0xff]   ;;  %v1140_v46 = vld [vmem:[#allocation11 + $0x20] sm:$0xff]  }
  0x87   :  { %985 = vmatpush3.bf16.msra.mxu0 %v1112_v3  ;;  %1005 = vmatpush3.bf16.msra.mxu1 %v1121_v8  ;;  %v1141_v47 = vld [vmem:[#allocation11 + $0x28] sm:$0xff]   ;;  %v897_v48 = vld [vmem:[%s1648_s6] ss:$0 sm:$0xff]  ;;  %v1143_v59 = vld [vmem:[#allocation11 + $0x38] sm:$0xff]  }
  0x88   :  { %986 = vmatprep.subr.bf16.mxu0 %v1347_v0  ;;  %1006 = vmatprep.subr.bf16.mxu1 %v1347_v0  ;;  %v1142_v58 = vld [vmem:[#allocation11 + $0x30] sm:$0xff]  }
  0x89   :  { %v900_v60 = vld [vmem:[%s1650_s8] ss:$0 sm:$0xff] }
  0x8b   :  { %987 = vmatpush3.bf16.msra.mxu0 %v1113_v5  ;;  %1007 = vmatpush3.bf16.msra.mxu1 %v1122_v10 }
  0x8c   :  { %988 = vmatprep.subr.bf16.mxu0 %v1347_v0  ;;  %1008 = vmatprep.subr.bf16.mxu1 %v1347_v0 }
  0x8f   :  { %989 = vmatpush3.bf16.msra.mxu0 %v1114_v7  ;;  %1009 = vmatpush3.bf16.msra.mxu1 %v1123_v12  ;;  %v1144_v12 = vld [vmem:[#allocation13] sm:$0xff]  }
  0x90   :  { %990 = vmatprep.subr.bf16.mxu0 %v1347_v0  ;;  %1010 = vmatprep.subr.bf16.mxu1 %v1347_v0 }
  0x93   :  { %991 = vmatpush3.bf16.msra.mxu0 %v1115_v9  ;;  %1011 = vmatpush3.bf16.msra.mxu1 %v1124_v14  ;;  %v1146_v14 = vld [vmem:[#allocation13 + $0x10] sm:$0xff]  }
  0x94   :  { %992 = vmatprep.subr.bf16.mxu0 %v1347_v0  ;;  %1012 = vmatprep.subr.bf16.mxu1 %v1347_v0 }
  0x97   :  { %993 = vmatpush3.bf16.msra.mxu0 %v1116_v11  ;;  %1013 = vmatpush3.bf16.msra.mxu1 %v1125_v16  ;;  %v1148_v16 = vld [vmem:[#allocation13 + $0x20] sm:$0xff]  }
  0x98   :  { %994 = vmatprep.subr.bf16.mxu0 %v1347_v0  ;;  %1014 = vmatprep.subr.bf16.mxu1 %v1347_v0 }
  0x9b   :  { %995 = vmatpush3.bf16.msra.mxu0 %v1117_v13  ;;  %1015 = vmatpush3.bf16.msra.mxu1 %v1126_v17  ;;  %v1145_v13 = vld [vmem:[#allocation13 + $0x8] sm:$0xff]  }
  0x9c   :  { %1020 = vmatprep.subr.bf16.mxu0 %v1347_v0  ;;  %1026 = vmatprep.subr.bf16.mxu1 %v1347_v0  ;;  %v1149_v17 = vld [vmem:[#allocation13 + $0x28] sm:$0xff]  }
  0x9e   :  { %997 = vmatmul.mubr.bf16.vlgmr.msra.gmra.mrb[0].mxu0 %v1118_v15  ;;  %v1147_v15 = vld [vmem:[#allocation13 + $0x18] sm:$0xff]  }
  0x9f   :  { %1022 = vmatprep.mubr.msk.bf16.mxu0 %vm1348_vm0, %v1347_v0 }
 0x171   :  { %v256_v19 = vpop.f32.mrb[0].mxu0 }
 0x172   :  { %v257_v20 = vadd.f32 %v879_v18, %v256_v19  ;;  %v998_v21 = vpop.f32.mrb[1].mxu0  ;;  %v917_v19 = vld [vmem:[%s1652_s10] ss:$0 sm:$0xff] }
 0x173   :  { %v259_v22 = vpop.f32.mrb[2].mxu0 }
 0x174   :  { %v260_v23 = vadd.f32 %v879_v18, %v259_v22  ;;  %v999_v24 = vpop.f32.mrb[3].mxu0  ;;  %v263_v25 = vmax.f32 %v257_v20, 0.0  ;;  %v1150_v18 = vld [vmem:[#allocation13 + $0x30] sm:$0xff]  }
 0x176   :  { %v264_v26 = vmax.f32 %v260_v23, 0.0 }
 0x178   :  { %v265_v27 = vpack.c.bf16 %v264_v26, %v263_v25 }
 0x17a   :  { %1017 = vmatmul.mubr.bf16.vlgmr.msra.gmra.mrb[0].mxu1 %v265_v27 }
 0x17b   :  { %1042 = vmatprep.mubr.msk.bf16.mxu1 %vm1348_vm0, %v1347_v0  ;;  %1027 = vmatpush3.bf16.msra.mxu1 %v1128_v28 }
 0x17c   :  { %1028 = vmatprep.subr.bf16.mxu1 %v1347_v0 }
 0x17f   :  { %1029 = vmatpush3.bf16.msra.mxu1 %v1129_v29  ;;  %v704_v29 = vld [vmem:[%s1644_s2] sm:$0xf]  ;;  %s1306_s2 = scalar_lea.vmem %s868_s5, 128 }
 0x180   :  { %1030 = vmatprep.subr.bf16.mxu1 %v1347_v0  ;;  %p1307_p0 = scmp.ne.s32.totalorder %s868_s5, %s1306_s2  ;;  %p1312_p2 = scmp.lt.s32.totalorder %s1306_s2, %s1306_s2 }
 0x182   :  { %p1313_p3 = por %p1312_p2, %p1311_p1 }
 0x183   :  { %1031 = vmatpush3.bf16.msra.mxu1 %v1130_v30 }
 0x184   :  { %1032 = vmatprep.subr.bf16.mxu1 %v1347_v0  ;;  %p1314_p4 = pnand %p1313_p3, %p1307_p0 }
 0x187   :  { %1033 = vmatpush3.bf16.msra.mxu1 %v1131_v31 }
 0x188   :  { %1034 = vmatprep.subr.bf16.mxu1 %v1347_v0 }
 0x18b   :  { %1035 = vmatpush3.bf16.msra.mxu1 %v1132_v32 }
 0x18c   :  { %1036 = vmatprep.subr.bf16.mxu1 %v1347_v0 }
 0x18f   :  { %1037 = vmatpush3.bf16.msra.mxu1 %v1133_v33 }
 0x190   :  { %1038 = vmatprep.subr.bf16.mxu1 %v1347_v0 }
 0x193   :  { %1039 = vmatpush3.bf16.msra.mxu1 %v1134_v40 }
 0x194   :  { %1040 = vmatprep.subr.bf16.mxu1 %v1347_v0 }
 0x197   :  { %1041 = vmatpush3.bf16.msra.mxu1 %v1135_v41 }
 0x198   :  { %1078 = vmatprep.subr.bf16.mxu1 %v1347_v0 }
 0x24d   :  { %v364_v34 = vpop.f32.mrb[0].mxu1 }
 0x24e   :  { %v1018_v35 = vpop.f32.mrb[1].mxu1 }
 0x24f   :  { %v367_v36 = vpop.f32.mrb[2].mxu1  ;;  %v920_v35 = vld [vmem:[%s1654_s12] ss:$0 sm:$0xff] }
 0x250   :  { %v371_v37 = vpack.c.bf16 %v367_v36, %v364_v34  ;;  %v1019_v38 = vpop.f32.mrb[3].mxu1 }
 0x252   :  { %1021 = vmatpush3.bf16.msra.mxu0 %v371_v37 }
 0x253   :  { %1046 = vmatprep.subr.bf16.mxu0 %v1347_v0 }
 0x255   :  { %1023 = vmatmul.mubr.msk.bf16.vlgmr.msra.gmra.mrb[4].mxu0 %vm384_vm1, %v1581_v39 }
 0x256   :  { %1062 = vmatprep.mubr.msk.bf16.mxu0 %vm1348_vm0, %v1347_v0  ;;  %1047 = vmatpush3.bf16.msra.mxu0 %v1136_v42 }
 0x257   :  { %1048 = vmatprep.subr.bf16.mxu0 %v1347_v0 }
 0x25a   :  { %1049 = vmatpush3.bf16.msra.mxu0 %v1137_v43 }
 0x25b   :  { %1050 = vmatprep.subr.bf16.mxu0 %v1347_v0 }
 0x25e   :  { %1051 = vmatpush3.bf16.msra.mxu0 %v1138_v44 }
 0x25f   :  { %1052 = vmatprep.subr.bf16.mxu0 %v1347_v0 }
 0x262   :  { %1053 = vmatpush3.bf16.msra.mxu0 %v1139_v45 }
 0x263   :  { %1054 = vmatprep.subr.bf16.mxu0 %v1347_v0 }
 0x266   :  { %1055 = vmatpush3.bf16.msra.mxu0 %v1140_v46 }
 0x267   :  { %1056 = vmatprep.subr.bf16.mxu0 %v1347_v0 }
 0x26a   :  { %1057 = vmatpush3.bf16.msra.mxu0 %v1141_v47 }
 0x26b   :  { %1058 = vmatprep.subr.bf16.mxu0 %v1347_v0 }
 0x26e   :  { %1059 = vmatpush3.bf16.msra.mxu0 %v1142_v58 }
 0x26f   :  { %1060 = vmatprep.subr.bf16.mxu0 %v1347_v0 }
 0x272   :  { %1061 = vmatpush3.bf16.msra.mxu0 %v1143_v59 }
 0x273   :  { %1066 = vmatprep.subr.bf16.mxu0 %v1347_v0 }
 0x328   :  { %v422_v49 = vpop.f32.mrb[4].mxu0 }
 0x329   :  { %v423_v50 = vadd.f32 %v897_v48, %v422_v49  ;;  %v1024_v51 = vpop.f32.mrb[5].mxu0 }
 0x32a   :  { %v425_v52 = vpop.f32.mrb[6].mxu0 }
 0x32b   :  { %v426_v53 = vadd.f32 %v897_v48, %v425_v52  ;;  %v1025_v54 = vpop.f32.mrb[7].mxu0  ;;  %v429_v55 = vmax.f32 %v423_v50, 0.0 }
 0x32d   :  { %v430_v56 = vmax.f32 %v426_v53, 0.0 }
 0x32f   :  { %v431_v57 = vpack.c.bf16 %v430_v56, %v429_v55 }
 0x331   :  { %1043 = vmatmul.mubr.bf16.vlgmr.msra.gmra.mrb[4].mxu1 %v431_v57 }
 0x332   :  { %1094 = vmatprep.mubr.msk.bf16.mxu1 %vm1348_vm0, %v1347_v0  ;;  %1079 = vmatpush3.bf16.msra.mxu1 %v1144_v12 }
 0x333   :  { %1080 = vmatprep.subr.bf16.mxu1 %v1347_v0 }
 0x336   :  { %1081 = vmatpush3.bf16.msra.mxu1 %v1145_v13 }
 0x337   :  { %1082 = vmatprep.subr.bf16.mxu1 %v1347_v0 }
 0x33a   :  { %1083 = vmatpush3.bf16.msra.mxu1 %v1146_v14 }
 0x33b   :  { %1084 = vmatprep.subr.bf16.mxu1 %v1347_v0 }
 0x33e   :  { %1085 = vmatpush3.bf16.msra.mxu1 %v1147_v15 }
 0x33f   :  { %1086 = vmatprep.subr.bf16.mxu1 %v1347_v0 }
 0x342   :  { %1087 = vmatpush3.bf16.msra.mxu1 %v1148_v16 }
 0x343   :  { %1088 = vmatprep.subr.bf16.mxu1 %v1347_v0 }
 0x346   :  { %1089 = vmatpush3.bf16.msra.mxu1 %v1149_v17 }
 0x347   :  { %1090 = vmatprep.subr.bf16.mxu1 %v1347_v0 }
 0x34a   :  { %1091 = vmatpush3.bf16.msra.mxu1 %v1150_v18 }
 0x34b   :  { %1092 = vmatprep.subr.bf16.mxu1 %v1347_v0 }
 0x404   :  { %v537_v61 = vpop.f32.mrb[4].mxu1 }
 0x405   :  { %v538_v62 = vadd.f32 %v900_v60, %v537_v61  ;;  %v1044_v63 = vpop.f32.mrb[5].mxu1 }
 0x406   :  { %v540_v1 = vpop.f32.mrb[6].mxu1 }
 0x407   :  { %v541_v2 = vadd.f32 %v900_v60, %v540_v1  ;;  %v1045_v3 = vpop.f32.mrb[7].mxu1  ;;  %v544_v4 = vmax.f32 %v538_v62, 0.0 }
 0x409   :  { %v545_v5 = vmax.f32 %v541_v2, 0.0 }
 0x40b   :  { %v546_v6 = vpack.c.bf16 %v545_v5, %v544_v4 }
 0x40d   :  { %1063 = vmatmul.mubr.bf16.vlgmr.msra.gmra.mrb[8].mxu0 %v546_v6 }
 0x40e   :  { %1068 = vmatprep.mubr.msk.bf16.mxu0 %vm1348_vm0, %v1347_v0 }
 0x4e0   :  { %v645_v7 = vpop.f32.mrb[8].mxu0 }
 0x4e1   :  { %v1064_v8 = vpop.f32.mrb[9].mxu0 }
 0x4e2   :  { %v648_v9 = vpop.f32.mrb[10].mxu0 }
 0x4e3   :  { %v652_v10 = vpack.c.bf16 %v648_v9, %v645_v7  ;;  %v1065_v11 = vpop.f32.mrb[11].mxu0 }
 0x4e5   :  { %1067 = vmatpush3.bf16.msra.mxu0 %v652_v10 }
 0x4e6   :  { %1072 = vmatprep.subr.bf16.mxu0 %v1347_v0 }
 0x4e8   :  { %1069 = vmatmul.mubr.msk.bf16.vlgmr.msra.gmra.mrb[12].mxu0 %vm384_vm1, %v1581_v39 }
 0x4e9   :  { %1074 = vmatprep.mubr.msk.bf16.mxu0 %vm1348_vm0, %v1347_v0  ;;  %v1151_v0 = vld [vmem:[#allocation13 + $0x38] sm:$0xff]  }
 0x4ea   :  { %1093 = vmatpush3.bf16.msra.mxu1 %v1151_v0 }
 0x5bb   :  { %v694_v20 = vpop.f32.mrb[12].mxu0 }
 0x5bc   :  { %v695_v21 = vadd.f32 %v917_v19, %v694_v20  ;;  %v1070_v22 = vpop.f32.mrb[13].mxu0 }
 0x5bd   :  { %v697_v23 = vpop.f32.mrb[14].mxu0 }
 0x5be   :  { %v698_v24 = vadd.f32 %v917_v19, %v697_v23  ;;  %v1071_v25 = vpop.f32.mrb[15].mxu0  ;;  %v701_v26 = vmax.f32 %v695_v21, 0.0 }
 0x5c0   :  { %v702_v27 = vmax.f32 %v698_v24, 0.0 }
 0x5c2   :  { %v703_v28 = vpack.c.bf16 %v702_v27, %v701_v26 }
 0x5c4   :  { %1073 = vmatpush3.bf16.msra.mxu0 %v703_v28 }
 0x5c7   :  { %1075 = vmatmul.mubr.msk.bf16.vlgmr.msra.gmra.mrb[16].mxu0 %vm384_vm1, %v704_v29 }
 0x69a   :  { %v742_v30 = vpop.f32.mrb[16].mxu0 }
 0x69b   :  { %v748_v31 = vpack.c.bf16 %v742_v30, %v742_v30  ;;  %v1076_v32 = vpop.f32.mrb[17].mxu0 }
 0x69c   :  { %v745_v33 = vpop.f32.mrb[18].mxu0 }
 0x69d   :  { %v1077_v34 = vpop.f32.mrb[19].mxu0  ;;  %1095 = vmatmul.mubr.bf16.vlgmr.msra.gmra.mrb[8].mxu1 %v748_v31 }
 0x770   :  { %v854_v36 = vpop.f32.mrb[8].mxu1 }
 0x771   :  { %v855_v37 = vadd.f32 %v920_v35, %v854_v36  ;;  %v1096_v38 = vpop.f32.mrb[9].mxu1 }
 0x772   :  { %v857_v39 = vpop.f32.mrb[10].mxu1 }
 0x773   :  { %860 = vst [vmem:[#allocation14] sm:$0xff] %v855_v37  ;;  %v1097_v40 = vpop.f32.mrb[11].mxu1 }
 0x774   :  { %1317 = shalt.err (!%p1314_p4)
}
 0x775   :  { %s1318_s12 = scalar_lea.hbm %s1655_s13, 128 }
 0x776   :  { %p1319_p5 = scmp.ne.s32.totalorder %s1655_s13, %s1318_s12  ;;  %p1322_p6 = scmp.lt.u32.totalorder %s1318_s12, %s1655_s13 }
 0x778   :  { %p1324_p7 = pnand %p1322_p6, %p1319_p5 }
 0x77a   :  { %1327 = shalt.err (!%p1324_p7)
}
 0x77b   :  { %870 = dma.vmem_to_hbm [thread:$0]  %s868_s5, 128, %s1655_s13, [#allocation4]  }
 0x77c   :  { %1336 = dma.done.wait [#allocation4], 128  }
 0x77d   :  { %1337 = vsyncadd [#allocation4], 4294967168 }
 0x77e   :  { %874 = vsyncpa [#allocation3], 1 }
 0x77f   :  { %875 = vsyncpa [#allocation6], 1 }
 0x780   :  { %876 = vsyncpa [#allocation9], 1 }
 0x781   :  { %877 = vsyncpa [#allocation12], 1 }
 0x782   :  { %878 = vsyncpa [#allocation4], 1 }

</bundles_post_ra>
